<compile_context>
chip_gen: v5e
topology: v5e:2x2
jax: 0.10.0
libtpu: 0.0.40
codegen_flags: <defaults>
</compile_context>

<pallas_src>
import jax
import jax.numpy as jnp
from jax import lax
from jax.experimental import pallas as pl
from jax.experimental.pallas import tpu as pltpu

# ----------------------------- static sizes (small) -------------------------------
T_PHONES = 8      # phones in the synthetic utterance
F_ART    = 62     # articulatory feature dim (ToucanTTS frontend uses 62)
H        = 32     # encoder hidden
UTT      = 64     # utterance-embedding dim (stands in for the 512-d default emb)
UTT_OFF  = 64     # column offset of the utterance embedding in the fused operand
XCAT_W   = 128    # fused encoder contraction dim: [phones(62) pad(2) | utt(64)]
MEL      = 80     # mel bins (matches ToucanTTS / HiFiGAN)
MEL_PAD  = 128    # lane-dense mel width (cols 80:128 are zero)
MAX_FR   = 64     # static upper bound on mel frames (dynamic length is masked)
HOP      = 256    # vocoder upsample factor (real HiFiGAN hop; lane-dense output)
VH       = 32     # vocoder hidden
NHEAD    = 8      # dur/pitch/energy head width padded 3 -> 8
AUXW     = 128    # lane-dense aux output width

# packed-slab layout (all row offsets sublane-aligned)
SLAB_W  = 256
R_WENC  = 0       # (128, H)  stacked [w1; wu]
R_WH    = 128     # (H, NHEAD)
R_WDEC  = 160     # (H, H)
R_WMEL  = 192     # (H, MEL_PAD)
R_WVF   = 224     # (H, VH)   = wmel @ wv1 (pre-fused)
R_WV2   = 256     # (VH, HOP)
W_ROWS  = 288


def _softplus(x):
    # lowering-friendly softplus (avoids log1p / logaddexp inside the kernel)
    return jnp.maximum(x, 0.0) + jnp.log(1.0 + jnp.exp(-jnp.abs(x)))


# ================================ fused Pallas kernel ==============================
def _fused_tts_kernel(scales_ref, xcat_ref, wslab_ref, bslab_ref,
                      wav_ref, mel_ref, aux_ref):
    f32 = jnp.float32
    dscale = scales_ref[0, 0]          # duration_scaling_factor (scalar, SMEM)
    pscale = scales_ref[0, 1]          # pitch_variance_scale
    escale = scales_ref[0, 2]          # energy_variance_scale

    # ---- static views into the packed parameter slabs ----
    w_enc = wslab_ref[R_WENC:R_WENC + XCAT_W, 0:H]        # (128, H)  [w1; wu]
    wh    = wslab_ref[R_WH:R_WH + H, 0:NHEAD]             # (H, 8)
    wdec  = wslab_ref[R_WDEC:R_WDEC + H, 0:H]             # (H, H)
    wmel  = wslab_ref[R_WMEL:R_WMEL + H, 0:MEL_PAD]       # (H, 128)
    wvf   = wslab_ref[R_WVF:R_WVF + H, 0:VH]              # (H, VH)   wmel@wv1
    wv2   = wslab_ref[R_WV2:R_WV2 + VH, 0:HOP]            # (VH, 256)

    b1    = bslab_ref[0:1, 0:H]
    bh    = bslab_ref[1:2, 0:NHEAD]
    wp    = bslab_ref[2:3, 0:H]
    we    = bslab_ref[3:4, 0:H]
    bdec  = bslab_ref[4:5, 0:H]
    bmel  = bslab_ref[5:6, 0:MEL_PAD]
    bvf   = bslab_ref[6:7, 0:VH]                          # bmel@wv1 + bv1
    bv2   = bslab_ref[7:8, 0:HOP]

    # ---- fused phone+utterance encoder (one K=128 matmul) + variance heads ----
    x = xcat_ref[0]                                                          # (T, 128)
    enc = jnp.tanh(jnp.dot(x, w_enc, preferred_element_type=f32) + b1)       # (T, H)
    preds = jnp.dot(enc, wh, preferred_element_type=f32) + bh                # (T, NHEAD)

    # ---- duration / pitch / energy post-processing (in-kernel, no XLA glue) ----
    dur_raw = _softplus(preds[:, 0:1]) * dscale                              # (T, 1)
    dur_col = jnp.clip(jnp.floor(dur_raw + 0.5), 1.0, float(MAX_FR))         # round-half-up

    pit_col = preds[:, 1:2]
    pm = jnp.sum(pit_col, axis=0, keepdims=True) * (1.0 / T_PHONES)          # (1, 1)
    pit_col = (pit_col - pm) * pscale + pm

    en_col = preds[:, 2:3]
    em = jnp.sum(en_col, axis=0, keepdims=True) * (1.0 / T_PHONES)           # (1, 1)
    en_col = (en_col - em) * escale + em

    # fold pitch / energy embeddings into the per-phone states BEFORE length
    # regulation (equivalent to adding them per frame, since each frame copies
    # exactly one phone's values).
    enc2 = enc + pit_col * wp + en_col * we                                  # (T, H)

    # ---- length regulation: cumsum -> one-hot frame->phone matrix -> MXU gather ----
    q = lax.broadcasted_iota(jnp.int32, (T_PHONES, T_PHONES), 0)             # source phone
    p = lax.broadcasted_iota(jnp.int32, (T_PHONES, T_PHONES), 1)             # target phone
    ends_row   = jnp.sum(jnp.where(q <= p, dur_col, 0.0), axis=0, keepdims=True)  # (1, T)
    starts_row = jnp.sum(jnp.where(q <  p, dur_col, 0.0), axis=0, keepdims=True)  # (1, T)

    fidx = lax.broadcasted_iota(jnp.int32, (MAX_FR, T_PHONES), 0).astype(f32)     # (F, T)
    onehot = jnp.logical_and(fidx >= starts_row, fidx < ends_row).astype(f32)     # (F, T)

    # valid-frame mask as a single VPU compare against the total duration
    # (identical to summing the contiguous, non-overlapping one-hot intervals)
    total = ends_row[:, T_PHONES - 1:T_PHONES]                                    # (1, 1)
    fcol = lax.broadcasted_iota(jnp.int32, (MAX_FR, 1), 0).astype(f32)            # (F, 1)
    mask = (fcol < total).astype(f32)                                             # (F, 1)

    up = jnp.dot(onehot, enc2, preferred_element_type=f32)                   # (F, H)

    # ---- mel decoder ----
    hd = jnp.tanh(up)
    hd = jnp.tanh(jnp.dot(hd, wdec, preferred_element_type=f32) + bdec)      # (F, H)
    mel = (jnp.dot(hd, wmel, preferred_element_type=f32) + bmel) * mask
    mel_ref[0] = mel                                                         # (F, 128) lane-dense

    # ---- HiFiGAN-style vocoder, fed directly from hd via the pre-fused wmel@wv1 ----
    hv = jnp.dot(hd, wvf, preferred_element_type=f32) + bvf                  # (F, VH)
    hv = jnp.where(hv > 0, hv, 0.1 * hv)                                     # leaky relu 0.1
    wav = jnp.tanh(jnp.dot(hv, wv2, preferred_element_type=f32) + bv2)       # (F, HOP)
    wav_ref[0] = wav * mask                                                  # lane-dense store

    # ---- per-phone diagnostics, lane-padded: col0=dur, col1=pitch, col2=energy ----
    col = lax.broadcasted_iota(jnp.int32, (T_PHONES, AUXW), 1)
    aux = (jnp.where(col == 0, dur_col, 0.0)
           + jnp.where(col == 1, pit_col, 0.0)
           + jnp.where(col == 2, en_col, 0.0))
    aux_ref[0] = aux                                                         # (T, AUXW)


# ================================ parameters ======================================
def init_params(key):
    """Stand-in weights, pre-packed into two lane-dense slabs (done once, offline)."""
    ks = jax.random.split(key, 16)
    s = 0.1
    f32 = jnp.float32
    w1   = jax.random.normal(ks[0],  (F_ART, H), f32) * s
    b1   = jax.random.normal(ks[1],  (1, H), f32) * s
    wu   = jax.random.normal(ks[2],  (UTT, H), f32) * s
    wh   = jax.random.normal(ks[3],  (H, 3), f32) * s
    bh   = jax.random.normal(ks[4],  (1, 3), f32) * s
    wp   = jax.random.normal(ks[5],  (1, H), f32) * s
    we   = jax.random.normal(ks[6],  (1, H), f32) * s
    wdec = jax.random.normal(ks[7],  (H, H), f32) * s
    bdec = jax.random.normal(ks[8],  (1, H), f32) * s
    wmel = jax.random.normal(ks[9],  (H, MEL), f32) * s
    bmel = jax.random.normal(ks[10], (1, MEL), f32) * s
    wv1  = jax.random.normal(ks[11], (MEL, VH), f32) * s
    bv1  = jnp.zeros((1, VH), f32)
    wv2  = jax.random.normal(ks[12], (VH, HOP), f32) * s
    bv2  = jnp.zeros((1, HOP), f32)

    # pre-fuse the mel -> vocoder-hidden contraction (removes mel from the wav path)
    wvf = wmel @ wv1                       # (H, VH)
    bvf = bmel @ wv1 + bv1                 # (1, VH)

    # ---- weight slab: every matrix in one zero-padded (288, 256) array ----
    wslab = jnp.zeros((W_ROWS, SLAB_W), f32)
    wslab = wslab.at[0:F_ART, 0:H].set(w1)                       # encoder rows 0:62
    wslab = wslab.at[UTT_OFF:UTT_OFF + UTT, 0:H].set(wu)         # encoder rows 64:128
    wslab = wslab.at[R_WH:R_WH + H, 0:3].set(wh)
    wslab = wslab.at[R_WDEC:R_WDEC + H, 0:H].set(wdec)
    wslab = wslab.at[R_WMEL:R_WMEL + H, 0:MEL].set(wmel)
    wslab = wslab.at[R_WVF:R_WVF + H, 0:VH].set(wvf)
    wslab = wslab.at[R_WV2:R_WV2 + VH, 0:HOP].set(wv2)

    # ---- bias slab: every (1, X) row vector in one (8, 256) array ----
    bslab = jnp.zeros((8, SLAB_W), f32)
    bslab = bslab.at[0, 0:H].set(b1[0])
    bslab = bslab.at[1, 0:3].set(bh[0])
    bslab = bslab.at[2, 0:H].set(wp[0])
    bslab = bslab.at[3, 0:H].set(we[0])
    bslab = bslab.at[4, 0:H].set(bdec[0])
    bslab = bslab.at[5, 0:MEL].set(bmel[0])
    bslab = bslab.at[6, 0:VH].set(bvf[0])
    bslab = bslab.at[7, 0:HOP].set(bv2[0])

    return dict(wslab=wslab, bslab=bslab)


# ================================ wrapper =========================================
@jax.jit
def toucan_tts_forward(phones, utt_emb, params,
                       duration_scaling_factor=1.0,
                       pitch_variance_scale=1.0,
                       energy_variance_scale=1.0):
    """Mirror of ToucanTTSInterface.forward (minus plotting), batched over utterances.

    phones:  (B, T_PHONES, F_ART) articulatory feature vectors
    utt_emb: (B, UTT) utterance embeddings
    Returns (wave, mel_ncl, durations, pitch, energy), each with a leading batch dim.
    """
    f32 = jnp.float32
    B = phones.shape[0]

    # fused encoder operand: [phones | 0-pad | broadcast(utt_emb)] -> (B, T, 128)
    xcat = jnp.zeros((B, T_PHONES, XCAT_W), f32)
    xcat = xcat.at[:, :, :F_ART].set(phones.astype(f32))
    xcat = xcat.at[:, :, UTT_OFF:UTT_OFF + UTT].set(
        jnp.broadcast_to(utt_emb.astype(f32)[:, None, :], (B, T_PHONES, UTT)))

    scales = jnp.stack([jnp.asarray(duration_scaling_factor, f32),
                        jnp.asarray(pitch_variance_scale, f32),
                        jnp.asarray(energy_variance_scale, f32),
                        jnp.asarray(0.0, f32)]).reshape(1, 4)

    # ---- cost estimate so XLA schedules the custom call sensibly ----
    flops_per_utt = 2 * (T_PHONES * XCAT_W * H + T_PHONES * H * NHEAD
                         + MAX_FR * T_PHONES * H + MAX_FR * H * H
                         + MAX_FR * H * MEL_PAD + MAX_FR * H * VH
                         + MAX_FR * VH * HOP)
    trans_per_utt = T_PHONES * H + 2 * MAX_FR * H + MAX_FR * HOP + 2 * T_PHONES
    bytes_acc = 4 * (4 + W_ROWS * SLAB_W + 8 * SLAB_W
                     + B * (T_PHONES * XCAT_W
                            + MAX_FR * HOP + MAX_FR * MEL_PAD + T_PHONES * AUXW))
    cost = pl.CostEstimate(flops=B * flops_per_utt,
                           transcendentals=B * trans_per_utt,
                           bytes_accessed=bytes_acc)

    wav, mel, aux = pl.pallas_call(
        _fused_tts_kernel,
        out_shape=(jax.ShapeDtypeStruct((B, MAX_FR, HOP), f32),      # waveform frames
                   jax.ShapeDtypeStruct((B, MAX_FR, MEL_PAD), f32),  # mel (lane-dense)
                   jax.ShapeDtypeStruct((B, T_PHONES, AUXW), f32)),  # dur/pitch/energy
        grid=(B,),
        in_specs=[
            pl.BlockSpec(memory_space=pltpu.MemorySpace.SMEM),               # scales
            pl.BlockSpec((1, T_PHONES, XCAT_W), lambda b: (b, 0, 0)),        # xcat
            pl.BlockSpec((W_ROWS, SLAB_W), lambda b: (0, 0)),                # weight slab
            pl.BlockSpec((8, SLAB_W), lambda b: (0, 0)),                     # bias slab
        ],
        out_specs=(
            pl.BlockSpec((1, MAX_FR, HOP), lambda b: (b, 0, 0)),
            pl.BlockSpec((1, MAX_FR, MEL_PAD), lambda b: (b, 0, 0)),
            pl.BlockSpec((1, T_PHONES, AUXW), lambda b: (b, 0, 0)),
        ),
        compiler_params=pltpu.CompilerParams(dimension_semantics=("parallel",)),
        cost_estimate=cost,
    )(scales, xcat, params['wslab'], params['bslab'])

    wave = wav.reshape(B, MAX_FR * HOP)                 # row-major flatten: free bitcast
    mel_ncl = jnp.transpose(mel[:, :, :MEL], (0, 2, 1)) # torch: mel.transpose(0,1) -> (80, frames)
    durations = aux[:, :, 0].astype(jnp.int32)
    pitch = aux[:, :, 1]
    energy = aux[:, :, 2]
    return wave, mel_ncl, durations, pitch, energy


# ==================================== main =========================================
if __name__ == "__main__":
    key = jax.random.PRNGKey(0)
    k_phone, k_utt, k_param = jax.random.split(key, 3)

    B = 2  # batch of utterances -> grid=(B,) "parallel" (second TC on v7x)
    # synthetic "phones": articulatory feature vectors produced by the text frontend
    phones = jax.random.normal(k_phone, (B, T_PHONES, F_ART), jnp.float32)
    # synthetic default utterance embedding (checkpoint['default_emb'] stand-in)
    utt_emb = jax.random.normal(k_utt, (B, UTT), jnp.float32)
    params = init_params(k_param)

    wave, mel_ncl, durations, pitch, energy = toucan_tts_forward(
        phones, utt_emb, params,
        duration_scaling_factor=1.0,
        pitch_variance_scale=1.0,
        energy_variance_scale=1.0)

    jax.block_until_ready(wave)
    assert wave.shape == (B, MAX_FR * HOP)
    assert mel_ncl.shape == (B, MEL, MAX_FR)
    assert durations.shape == (B, T_PHONES)
    assert pitch.shape == (B, T_PHONES)
    assert energy.shape == (B, T_PHONES)
    assert bool(jnp.all(jnp.isfinite(wave)))
    assert bool(jnp.all(durations >= 1))
    print("KERNEL_OK")
</pallas_src>

<mosaic_0001>
module attributes {stable_mosaic.version = 11 : i64} {
  func.func @_fused_tts_kernel(%arg0: i32, %arg1: memref<1x4xf32, #tpu.memory_space<smem>>, %arg2: memref<1x8x128xf32, #tpu.memory_space<vmem>>, %arg3: memref<288x256xf32, #tpu.memory_space<vmem>>, %arg4: memref<8x256xf32, #tpu.memory_space<vmem>>, %arg5: memref<1x64x256xf32, #tpu.memory_space<vmem>>, %arg6: memref<1x64x128xf32, #tpu.memory_space<vmem>>, %arg7: memref<1x8x128xf32, #tpu.memory_space<vmem>>) attributes {dimension_semantics = [#tpu.dimension_semantics<parallel>], iteration_bounds = array<i64: 2>, scalar_prefetch = 0 : i64, scratch_operands = 0 : i64, tpu.core_type = #tpu.core_type<tc>, window_params = [{transform_indices = @transform_0, window_bounds = array<i64: 1, 4>}, {transform_indices = @transform_1, window_bounds = array<i64: 1, 8, 128>}, {pipeline_mode = #tpu.pipeline_mode<synchronous>, transform_indices = @transform_2, window_bounds = array<i64: 288, 256>}, {pipeline_mode = #tpu.pipeline_mode<synchronous>, transform_indices = @transform_3, window_bounds = array<i64: 8, 256>}, {transform_indices = @transform_4, window_bounds = array<i64: 1, 64, 256>}, {transform_indices = @transform_5, window_bounds = array<i64: 1, 64, 128>}, {transform_indices = @transform_6, window_bounds = array<i64: 1, 8, 128>}]} {
    %c0 = arith.constant 0 : index
    %c0_0 = arith.constant 0 : index
    %0 = memref.load %arg1[%c0, %c0_0] : memref<1x4xf32, #tpu.memory_space<smem>>
    %c0_1 = arith.constant 0 : index
    %c1 = arith.constant 1 : index
    %1 = memref.load %arg1[%c0_1, %c1] : memref<1x4xf32, #tpu.memory_space<smem>>
    %c0_2 = arith.constant 0 : index
    %c2 = arith.constant 2 : index
    %2 = memref.load %arg1[%c0_2, %c2] : memref<1x4xf32, #tpu.memory_space<smem>>
    %c0_3 = arith.constant 0 : index
    %c0_4 = arith.constant 0 : index
    %3 = vector.load %arg3[%c0_3, %c0_4] : memref<288x256xf32, #tpu.memory_space<vmem>>, vector<128x32xf32>
    %c128 = arith.constant 128 : index
    %c0_5 = arith.constant 0 : index
    %4 = vector.load %arg3[%c128, %c0_5] : memref<288x256xf32, #tpu.memory_space<vmem>>, vector<32x8xf32>
    %c160 = arith.constant 160 : index
    %c0_6 = arith.constant 0 : index
    %5 = vector.load %arg3[%c160, %c0_6] : memref<288x256xf32, #tpu.memory_space<vmem>>, vector<32x32xf32>
    %c192 = arith.constant 192 : index
    %c0_7 = arith.constant 0 : index
    %6 = vector.load %arg3[%c192, %c0_7] : memref<288x256xf32, #tpu.memory_space<vmem>>, vector<32x128xf32>
    %c224 = arith.constant 224 : index
    %c0_8 = arith.constant 0 : index
    %7 = vector.load %arg3[%c224, %c0_8] : memref<288x256xf32, #tpu.memory_space<vmem>>, vector<32x32xf32>
    %c256 = arith.constant 256 : index
    %c0_9 = arith.constant 0 : index
    %8 = vector.load %arg3[%c256, %c0_9] : memref<288x256xf32, #tpu.memory_space<vmem>>, vector<32x256xf32>
    %c0_10 = arith.constant 0 : index
    %c0_11 = arith.constant 0 : index
    %9 = vector.load %arg4[%c0_10, %c0_11] : memref<8x256xf32, #tpu.memory_space<vmem>>, vector<1x32xf32>
    %c1_12 = arith.constant 1 : index
    %c0_13 = arith.constant 0 : index
    %10 = vector.load %arg4[%c1_12, %c0_13] : memref<8x256xf32, #tpu.memory_space<vmem>>, vector<1x8xf32>
    %c2_14 = arith.constant 2 : index
    %c0_15 = arith.constant 0 : index
    %11 = vector.load %arg4[%c2_14, %c0_15] : memref<8x256xf32, #tpu.memory_space<vmem>>, vector<1x32xf32>
    %c3 = arith.constant 3 : index
    %c0_16 = arith.constant 0 : index
    %12 = vector.load %arg4[%c3, %c0_16] : memref<8x256xf32, #tpu.memory_space<vmem>>, vector<1x32xf32>
    %c4 = arith.constant 4 : index
    %c0_17 = arith.constant 0 : index
    %13 = vector.load %arg4[%c4, %c0_17] : memref<8x256xf32, #tpu.memory_space<vmem>>, vector<1x32xf32>
    %c5 = arith.constant 5 : index
    %c0_18 = arith.constant 0 : index
    %14 = vector.load %arg4[%c5, %c0_18] : memref<8x256xf32, #tpu.memory_space<vmem>>, vector<1x128xf32>
    %c6 = arith.constant 6 : index
    %c0_19 = arith.constant 0 : index
    %15 = vector.load %arg4[%c6, %c0_19] : memref<8x256xf32, #tpu.memory_space<vmem>>, vector<1x32xf32>
    %c7 = arith.constant 7 : index
    %c0_20 = arith.constant 0 : index
    %16 = vector.load %arg4[%c7, %c0_20] : memref<8x256xf32, #tpu.memory_space<vmem>>, vector<1x256xf32>
    %c0_21 = arith.constant 0 : index
    %c0_22 = arith.constant 0 : index
    %c0_23 = arith.constant 0 : index
    %17 = vector.load %arg2[%c0_21, %c0_22, %c0_23] : memref<1x8x128xf32, #tpu.memory_space<vmem>>, vector<1x8x128xf32>
    %18 = vector.shape_cast %17 : vector<1x8x128xf32> to vector<8x128xf32>
    %cst = arith.constant dense<0.000000e+00> : vector<8x32xf32>
    %19 = tpu.matmul %18, %3, %cst {dimension_numbers = #tpu.dot_dimension_numbers<[1], [0], [0], [1], [0, 0, 1, 1], [], []>} : vector<8x128xf32>, vector<128x32xf32>, vector<8x32xf32> -> vector<8x32xf32>
    %20 = vector.broadcast %9 : vector<1x32xf32> to vector<8x32xf32>
    %21 = arith.addf %19, %20 : vector<8x32xf32>
    %22 = math.tanh %21 : vector<8x32xf32>
    %cst_24 = arith.constant dense<0.000000e+00> : vector<8x8xf32>
    %23 = tpu.matmul %22, %4, %cst_24 {dimension_numbers = #tpu.dot_dimension_numbers<[1], [0], [0], [1], [0, 0, 1, 1], [], []>} : vector<8x32xf32>, vector<32x8xf32>, vector<8x8xf32> -> vector<8x8xf32>
    %24 = vector.broadcast %10 : vector<1x8xf32> to vector<8x8xf32>
    %25 = arith.addf %23, %24 : vector<8x8xf32>
    %26 = vector.extract_strided_slice %25 {offsets = [0, 0], sizes = [8, 1], strides = [1, 1]} : vector<8x8xf32> to vector<8x1xf32>
    %cst_25 = arith.constant 0.000000e+00 : f32
    %27 = vector.broadcast %cst_25 : f32 to vector<8x1xf32>
    %28 = arith.maximumf %26, %27 : vector<8x1xf32>
    %29 = math.absf %26 : vector<8x1xf32>
    %cst_26 = arith.constant 0.000000e+00 : f32
    %30 = vector.broadcast %cst_26 : f32 to vector<8x1xf32>
    %31 = arith.subf %30, %29 : vector<8x1xf32>
    %32 = math.exp %31 : vector<8x1xf32>
    %cst_27 = arith.constant 1.000000e+00 : f32
    %33 = vector.broadcast %cst_27 : f32 to vector<8x1xf32>
    %34 = arith.addf %33, %32 : vector<8x1xf32>
    %35 = math.log %34 : vector<8x1xf32>
    %36 = arith.addf %28, %35 : vector<8x1xf32>
    %37 = vector.broadcast %0 : f32 to vector<8x1xf32>
    %38 = arith.mulf %36, %37 : vector<8x1xf32>
    %cst_28 = arith.constant 5.000000e-01 : f32
    %39 = vector.broadcast %cst_28 : f32 to vector<8x1xf32>
    %40 = arith.addf %38, %39 : vector<8x1xf32>
    %41 = math.floor %40 : vector<8x1xf32>
    %cst_29 = arith.constant 1.000000e+00 : f32
    %cst_30 = arith.constant 6.400000e+01 : f32
    %42 = vector.broadcast %cst_29 : f32 to vector<8x1xf32>
    %43 = arith.maximumf %42, %41 : vector<8x1xf32>
    %44 = vector.broadcast %cst_30 : f32 to vector<8x1xf32>
    %45 = arith.minimumf %44, %43 : vector<8x1xf32>
    %46 = vector.extract_strided_slice %25 {offsets = [0, 1], sizes = [8, 1], strides = [1, 1]} : vector<8x8xf32> to vector<8x1xf32>
    %cst_31 = arith.constant dense<0.000000e+00> : vector<1xf32>
    %47 = vector.multi_reduction <add>, %46, %cst_31 [0] : vector<8x1xf32> to vector<1xf32>
    %48 = vector.shape_cast %47 : vector<1xf32> to vector<1x1xf32>
    %cst_32 = arith.constant 1.250000e-01 : f32
    %49 = vector.broadcast %cst_32 : f32 to vector<1x1xf32>
    %50 = arith.mulf %48, %49 : vector<1x1xf32>
    %51 = vector.broadcast %50 : vector<1x1xf32> to vector<8x1xf32>
    %52 = arith.subf %46, %51 : vector<8x1xf32>
    %53 = vector.broadcast %1 : f32 to vector<8x1xf32>
    %54 = arith.mulf %52, %53 : vector<8x1xf32>
    %55 = vector.broadcast %50 : vector<1x1xf32> to vector<8x1xf32>
    %56 = arith.addf %54, %55 : vector<8x1xf32>
    %57 = vector.extract_strided_slice %25 {offsets = [0, 2], sizes = [8, 1], strides = [1, 1]} : vector<8x8xf32> to vector<8x1xf32>
    %cst_33 = arith.constant dense<0.000000e+00> : vector<1xf32>
    %58 = vector.multi_reduction <add>, %57, %cst_33 [0] : vector<8x1xf32> to vector<1xf32>
    %59 = vector.shape_cast %58 : vector<1xf32> to vector<1x1xf32>
    %cst_34 = arith.constant 1.250000e-01 : f32
    %60 = vector.broadcast %cst_34 : f32 to vector<1x1xf32>
    %61 = arith.mulf %59, %60 : vector<1x1xf32>
    %62 = vector.broadcast %61 : vector<1x1xf32> to vector<8x1xf32>
    %63 = arith.subf %57, %62 : vector<8x1xf32>
    %64 = vector.broadcast %2 : f32 to vector<8x1xf32>
    %65 = arith.mulf %63, %64 : vector<8x1xf32>
    %66 = vector.broadcast %61 : vector<1x1xf32> to vector<8x1xf32>
    %67 = arith.addf %65, %66 : vector<8x1xf32>
    %68 = vector.broadcast %56 : vector<8x1xf32> to vector<8x32xf32>
    %69 = vector.broadcast %11 : vector<1x32xf32> to vector<8x32xf32>
    %70 = arith.mulf %68, %69 : vector<8x32xf32>
    %71 = arith.addf %22, %70 : vector<8x32xf32>
    %72 = vector.broadcast %67 : vector<8x1xf32> to vector<8x32xf32>
    %73 = vector.broadcast %12 : vector<1x32xf32> to vector<8x32xf32>
    %74 = arith.mulf %72, %73 : vector<8x32xf32>
    %75 = arith.addf %71, %74 : vector<8x32xf32>
    %76 = tpu.iota {dimensions = array<i32: 0>} : vector<8x8xi32>
    %77 = tpu.iota {dimensions = array<i32: 1>} : vector<8x8xi32>
    %78 = arith.cmpi sle, %76, %77 : vector<8x8xi32>
    %cst_35 = arith.constant 0.000000e+00 : f32
    %79 = vector.shape_cast %45 : vector<8x1xf32> to vector<8x1xf32>
    %80 = vector.broadcast %79 : vector<8x1xf32> to vector<8x8xf32>
    %81 = vector.broadcast %cst_35 : f32 to vector<8x8xf32>
    %82 = arith.select %78, %80, %81 : vector<8x8xi1>, vector<8x8xf32>
    %cst_36 = arith.constant dense<0.000000e+00> : vector<8xf32>
    %83 = vector.multi_reduction <add>, %82, %cst_36 [0] : vector<8x8xf32> to vector<8xf32>
    %84 = vector.shape_cast %83 : vector<8xf32> to vector<1x8xf32>
    %85 = arith.cmpi slt, %76, %77 : vector<8x8xi32>
    %cst_37 = arith.constant 0.000000e+00 : f32
    %86 = vector.shape_cast %45 : vector<8x1xf32> to vector<8x1xf32>
    %87 = vector.broadcast %86 : vector<8x1xf32> to vector<8x8xf32>
    %88 = vector.broadcast %cst_37 : f32 to vector<8x8xf32>
    %89 = arith.select %85, %87, %88 : vector<8x8xi1>, vector<8x8xf32>
    %cst_38 = arith.constant dense<0.000000e+00> : vector<8xf32>
    %90 = vector.multi_reduction <add>, %89, %cst_38 [0] : vector<8x8xf32> to vector<8xf32>
    %91 = vector.shape_cast %90 : vector<8xf32> to vector<1x8xf32>
    %92 = tpu.iota {dimensions = array<i32: 0>} : vector<64x8xi32>
    %93 = arith.sitofp %92 : vector<64x8xi32> to vector<64x8xf32>
    %94 = vector.broadcast %91 : vector<1x8xf32> to vector<64x8xf32>
    %95 = arith.cmpf oge, %93, %94 : vector<64x8xf32>
    %96 = vector.broadcast %84 : vector<1x8xf32> to vector<64x8xf32>
    %97 = arith.cmpf olt, %93, %96 : vector<64x8xf32>
    %98 = arith.andi %95, %97 : vector<64x8xi1>
    %99 = arith.extui %98 : vector<64x8xi1> to vector<64x8xi32>
    %100 = arith.sitofp %99 : vector<64x8xi32> to vector<64x8xf32>
    %101 = vector.extract_strided_slice %84 {offsets = [0, 7], sizes = [1, 1], strides = [1, 1]} : vector<1x8xf32> to vector<1x1xf32>
    %102 = tpu.iota {dimensions = array<i32: 0>} : vector<64x1xi32>
    %103 = arith.sitofp %102 : vector<64x1xi32> to vector<64x1xf32>
    %104 = vector.broadcast %101 : vector<1x1xf32> to vector<64x1xf32>
    %105 = arith.cmpf olt, %103, %104 : vector<64x1xf32>
    %106 = arith.extui %105 : vector<64x1xi1> to vector<64x1xi32>
    %107 = arith.sitofp %106 : vector<64x1xi32> to vector<64x1xf32>
    %cst_39 = arith.constant dense<0.000000e+00> : vector<64x32xf32>
    %108 = tpu.matmul %100, %75, %cst_39 {dimension_numbers = #tpu.dot_dimension_numbers<[1], [0], [0], [1], [0, 0, 1, 1], [], []>} : vector<64x8xf32>, vector<8x32xf32>, vector<64x32xf32> -> vector<64x32xf32>
    %109 = math.tanh %108 : vector<64x32xf32>
    %cst_40 = arith.constant dense<0.000000e+00> : vector<64x32xf32>
    %110 = tpu.matmul %109, %5, %cst_40 {dimension_numbers = #tpu.dot_dimension_numbers<[1], [0], [0], [1], [0, 0, 1, 1], [], []>} : vector<64x32xf32>, vector<32x32xf32>, vector<64x32xf32> -> vector<64x32xf32>
    %111 = vector.broadcast %13 : vector<1x32xf32> to vector<64x32xf32>
    %112 = arith.addf %110, %111 : vector<64x32xf32>
    %113 = math.tanh %112 : vector<64x32xf32>
    %cst_41 = arith.constant dense<0.000000e+00> : vector<64x128xf32>
    %114 = tpu.matmul %113, %6, %cst_41 {dimension_numbers = #tpu.dot_dimension_numbers<[1], [0], [0], [1], [0, 0, 1, 1], [], []>} : vector<64x32xf32>, vector<32x128xf32>, vector<64x128xf32> -> vector<64x128xf32>
    %115 = vector.broadcast %14 : vector<1x128xf32> to vector<64x128xf32>
    %116 = arith.addf %114, %115 : vector<64x128xf32>
    %117 = vector.broadcast %107 : vector<64x1xf32> to vector<64x128xf32>
    %118 = arith.mulf %116, %117 : vector<64x128xf32>
    %c0_42 = arith.constant 0 : index
    %c0_43 = arith.constant 0 : index
    %c0_44 = arith.constant 0 : index
    %119 = vector.load %arg6[%c0_42, %c0_43, %c0_44] : memref<1x64x128xf32, #tpu.memory_space<vmem>>, vector<1x64x128xf32>
    %120 = vector.shape_cast %119 : vector<1x64x128xf32> to vector<64x128xf32>
    %121 = vector.shape_cast %118 : vector<64x128xf32> to vector<1x64x128xf32>
    tpu.vector_store %arg6[%c0_42, %c0_43, %c0_44], %121 {strides = array<i32>} : memref<1x64x128xf32, #tpu.memory_space<vmem>>, vector<1x64x128xf32>,
    %cst_45 = arith.constant dense<0.000000e+00> : vector<64x32xf32>
    %122 = tpu.matmul %113, %7, %cst_45 {dimension_numbers = #tpu.dot_dimension_numbers<[1], [0], [0], [1], [0, 0, 1, 1], [], []>} : vector<64x32xf32>, vector<32x32xf32>, vector<64x32xf32> -> vector<64x32xf32>
    %123 = vector.broadcast %15 : vector<1x32xf32> to vector<64x32xf32>
    %124 = arith.addf %122, %123 : vector<64x32xf32>
    %cst_46 = arith.constant 0.000000e+00 : f32
    %125 = vector.broadcast %cst_46 : f32 to vector<64x32xf32>
    %126 = arith.cmpf ogt, %124, %125 : vector<64x32xf32>
    %cst_47 = arith.constant 1.000000e-01 : f32
    %127 = vector.broadcast %cst_47 : f32 to vector<64x32xf32>
    %128 = arith.mulf %127, %124 : vector<64x32xf32>
    %129 = arith.select %126, %124, %128 : vector<64x32xi1>, vector<64x32xf32>
    %cst_48 = arith.constant dense<0.000000e+00> : vector<64x256xf32>
    %130 = tpu.matmul %129, %8, %cst_48 {dimension_numbers = #tpu.dot_dimension_numbers<[1], [0], [0], [1], [0, 0, 1, 1], [], []>} : vector<64x32xf32>, vector<32x256xf32>, vector<64x256xf32> -> vector<64x256xf32>
    %131 = vector.broadcast %16 : vector<1x256xf32> to vector<64x256xf32>
    %132 = arith.addf %130, %131 : vector<64x256xf32>
    %133 = math.tanh %132 : vector<64x256xf32>
    %134 = vector.broadcast %107 : vector<64x1xf32> to vector<64x256xf32>
    %135 = arith.mulf %133, %134 : vector<64x256xf32>
    %c0_49 = arith.constant 0 : index
    %c0_50 = arith.constant 0 : index
    %c0_51 = arith.constant 0 : index
    %136 = vector.load %arg5[%c0_49, %c0_50, %c0_51] : memref<1x64x256xf32, #tpu.memory_space<vmem>>, vector<1x64x256xf32>
    %137 = vector.shape_cast %136 : vector<1x64x256xf32> to vector<64x256xf32>
    %138 = vector.shape_cast %135 : vector<64x256xf32> to vector<1x64x256xf32>
    tpu.vector_store %arg5[%c0_49, %c0_50, %c0_51], %138 {strides = array<i32>} : memref<1x64x256xf32, #tpu.memory_space<vmem>>, vector<1x64x256xf32>,
    %139 = tpu.iota {dimensions = array<i32: 1>} : vector<8x128xi32>
    %c0_i32 = arith.constant 0 : i32
    %140 = vector.broadcast %c0_i32 : i32 to vector<8x128xi32>
    %141 = arith.cmpi eq, %139, %140 : vector<8x128xi32>
    %cst_52 = arith.constant 0.000000e+00 : f32
    %142 = vector.shape_cast %45 : vector<8x1xf32> to vector<8x1xf32>
    %143 = vector.broadcast %142 : vector<8x1xf32> to vector<8x128xf32>
    %144 = vector.broadcast %cst_52 : f32 to vector<8x128xf32>
    %145 = arith.select %141, %143, %144 : vector<8x128xi1>, vector<8x128xf32>
    %c1_i32 = arith.constant 1 : i32
    %146 = vector.broadcast %c1_i32 : i32 to vector<8x128xi32>
    %147 = arith.cmpi eq, %139, %146 : vector<8x128xi32>
    %cst_53 = arith.constant 0.000000e+00 : f32
    %148 = vector.shape_cast %56 : vector<8x1xf32> to vector<8x1xf32>
    %149 = vector.broadcast %148 : vector<8x1xf32> to vector<8x128xf32>
    %150 = vector.broadcast %cst_53 : f32 to vector<8x128xf32>
    %151 = arith.select %147, %149, %150 : vector<8x128xi1>, vector<8x128xf32>
    %152 = arith.addf %145, %151 : vector<8x128xf32>
    %c2_i32 = arith.constant 2 : i32
    %153 = vector.broadcast %c2_i32 : i32 to vector<8x128xi32>
    %154 = arith.cmpi eq, %139, %153 : vector<8x128xi32>
    %cst_54 = arith.constant 0.000000e+00 : f32
    %155 = vector.shape_cast %67 : vector<8x1xf32> to vector<8x1xf32>
    %156 = vector.broadcast %155 : vector<8x1xf32> to vector<8x128xf32>
    %157 = vector.broadcast %cst_54 : f32 to vector<8x128xf32>
    %158 = arith.select %154, %156, %157 : vector<8x128xi1>, vector<8x128xf32>
    %159 = arith.addf %152, %158 : vector<8x128xf32>
    %c0_55 = arith.constant 0 : index
    %c0_56 = arith.constant 0 : index
    %c0_57 = arith.constant 0 : index
    %160 = vector.load %arg7[%c0_55, %c0_56, %c0_57] : memref<1x8x128xf32, #tpu.memory_space<vmem>>, vector<1x8x128xf32>
    %161 = vector.shape_cast %160 : vector<1x8x128xf32> to vector<8x128xf32>
    %162 = vector.shape_cast %159 : vector<8x128xf32> to vector<1x8x128xf32>
    tpu.vector_store %arg7[%c0_55, %c0_56, %c0_57], %162 {strides = array<i32>} : memref<1x8x128xf32, #tpu.memory_space<vmem>>, vector<1x8x128xf32>,
    return
  }
  func.func @transform_0(%arg0: i32) -> (i32, i32) {
    %c0_i32 = arith.constant 0 : i32
    %c0_i32_0 = arith.constant 0 : i32
    %c0_i32_1 = arith.constant 0 : i32
    return %c0_i32, %c0_i32_0 : i32, i32
  }
  func.func @transform_1(%arg0: i32) -> (i32, i32, i32) {
    %c0_i32 = arith.constant 0 : i32
    %c0_i32_0 = arith.constant 0 : i32
    %c0_i32_1 = arith.constant 0 : i32
    return %arg0, %c0_i32, %c0_i32_0 : i32, i32, i32
  }
  func.func @transform_2(%arg0: i32) -> (i32, i32) {
    %c0_i32 = arith.constant 0 : i32
    %c0_i32_0 = arith.constant 0 : i32
    %c0_i32_1 = arith.constant 0 : i32
    return %c0_i32, %c0_i32_0 : i32, i32
  }
  func.func @transform_3(%arg0: i32) -> (i32, i32) {
    %c0_i32 = arith.constant 0 : i32
    %c0_i32_0 = arith.constant 0 : i32
    %c0_i32_1 = arith.constant 0 : i32
    return %c0_i32, %c0_i32_0 : i32, i32
  }
  func.func @transform_4(%arg0: i32) -> (i32, i32, i32) {
    %c0_i32 = arith.constant 0 : i32
    %c0_i32_0 = arith.constant 0 : i32
    %c0_i32_1 = arith.constant 0 : i32
    return %arg0, %c0_i32, %c0_i32_0 : i32, i32, i32
  }
  func.func @transform_5(%arg0: i32) -> (i32, i32, i32) {
    %c0_i32 = arith.constant 0 : i32
    %c0_i32_0 = arith.constant 0 : i32
    %c0_i32_1 = arith.constant 0 : i32
    return %arg0, %c0_i32, %c0_i32_0 : i32, i32, i32
  }
  func.func @transform_6(%arg0: i32) -> (i32, i32, i32) {
    %c0_i32 = arith.constant 0 : i32
    %c0_i32_0 = arith.constant 0 : i32
    %c0_i32_1 = arith.constant 0 : i32
    return %arg0, %c0_i32, %c0_i32_0 : i32, i32, i32
  }
}

</mosaic_0001>

<bundles_post_ra>
// kernel: toucan_tts_forward.1
= control target key start
LH: loop header
LB: loop body
LE: loop exit
PB: predicated region body
PF: predicated region fallthrough
CT: control target
= control target key end

     0   :  { %12 = vsyncpa [#allocation4], 0  ;;  %s1871_s0 = inlined_call_operand.vmem [shape: f32[1,4], index: 0, kind: input, shape index: {}]   ;;  %s1872_s1 = inlined_call_operand.vmem [shape: f32[2,8,128], index: 1, kind: input, shape index: {}]   ;;  %s1873_s2 = inlined_call_operand.hbm [shape: f32[288,256], index: 2, kind: input, shape index: {}]   ;;  %s1874_s3 = inlined_call_operand.vmem [shape: f32[8,256], index: 3, kind: input, shape index: {}]   ;;  %s1875_s4 = inlined_call_operand.vmem [shape: f32[2,64,256], index: 4, kind: output, shape index: {0}]   ;;  %s1876_s5 = inlined_call_operand.vmem [shape: f32[2,64,128], index: 5, kind: output, shape index: {1}]   ;;  %s1877_s6 = inlined_call_operand.vmem [shape: f32[2,8,128], index: 6, kind: output, shape index: {2}]  }
   0x1   :  { %13 = vsyncpa [#allocation3], 0  ;;  %s1528_s21 = smov 0  }
   0x2 LB: > { %s203_s24 = sshll.u32 %s1871_s0, 4  ;;  %s1537_s25 = sadd.s32 4294967295, %s1482_s21   ;;  %s1482_s21 = sphi %s1528_s21, %s19_s21   ;;  %s204_s24 = int_to_ptr.vmem [resolvable:$true] %s203_s24 }
   0x3   : > { %p1200_p0 = scmp.ge.s32.totalorder %s1482_s21, 1  ;;  %p191_p1 = scmp.lt.s32.totalorder %s1482_s21, 3 }
   0x4   : > { %p1306_p2 = scmp.eq.s32.totalorder %s1537_s25, 0  ;;  %s212_s29 = sshll.u32 %s1873_s2, 4  ;;  %s213_s29 = int_to_ptr.hbm [resolvable:$true] %s212_s29 }
   0x5   : > { %p1542_p3 = pnand %p1200_p0, %p191_p1  ;;  %s1484_s30 = smov [#allocation5]  }
   0x6   : > { %s214_s7 = sshll.u32 %s1484_s30, 4  ;;  %s1485_s8 = smov [#allocation2]   ;;  %s215_s7 = int_to_ptr.vmem [resolvable:$true] %s214_s7 }
   0x7   : > { %p1299_p4 = pneg %p1542_p3  ;;  %s1486_s9 = smov 256  }
   0x8   : > { %s1487_s10 = smov 16   ;;  %240 = sbr.rel (%p1542_p3) target bundleno = 1081 (0x439), region = 36 }
   0x9   : > { %p1300_p5 = pnand %p1306_p2, %p1299_p4 }
   0xb   : > { %1302 = dma.vmem_to_smem (!%p1300_p5), %s204_s24, 16, %s1485_s8, [#allocation4]  }
   0xc   : > { %1305 = dma.hbm_to_vmem [thread:$0]  (!%p1300_p5), %s213_s29, 9216, %s215_s7, [#allocation3], %s1486_s9, %s1486_s9, %s1487_s10  }
   0xd   : > { %1473 = dma.done.wait (%p1306_p2), [#allocation4], 16  }
   0xe   : > { %1475 = vsyncadd (%p1306_p2), [#allocation4], 4294967280 }
   0xf   : > { %1477 = dma.done.wait (%p1306_p2), [#allocation3], 9216  }
  0x10   : > { %1479 = vsyncadd (%p1306_p2), [#allocation3], 4294958080 }
  0x11   : > { %252 = sfence }
  0x12   : > { %v321_v0 = vld [vmem:[#allocation5 + $0xf0] sm:$0xff]  ;;  %v320_v1 = vld [vmem:[#allocation5 + $0xe0] sm:$0xff]  ;;  %p285_p6 = scmp.lt.s32.totalorder %s1537_s25, 1  ;;  %vm377_vm0 = vcmask 261120   ;;  %v1488_v25 = vmov 2   ;;  %v1489_v26 = vmov 0  }
  0x13   : > { %356 = vmatpush.msra.mxu0 %v321_v0  ;;  %v319_v2 = vld [vmem:[#allocation5 + $0xd0] sm:$0xff]  ;;  %v318_v3 = vld [vmem:[#allocation5 + $0xc0] sm:$0xff]  ;;  %1329 = vset.pattern.permute.xlu1 %v1488_v25  ;;  %vm429_vm1 = vcmask 23568   ;;  %vm416_vm2 = vcmask 15368   ;;  %s1214_s19 = sld [smem:[#allocation2 + $0x2]]  ;;  %vm467_vm5 = vcmask 64512  }
  0x14   : > { %v317_v4 = vld [vmem:[#allocation5 + $0xb0] sm:$0xff]  ;;  %v316_v5 = vld [vmem:[#allocation5 + $0xa0] sm:$0xff]  ;;  %s1898_s25 = smov (!%p285_p6, %s1537_s25), 1  ;;  %1327 = vset.pattern.permute.xlu0 %v1489_v26  ;;  %s303_s20 = sld [smem:[#allocation2]] }
  0x15   : > { %357 = vmatpush.msra.mxu0 %v320_v1  ;;  %v315_v6 = vld [vmem:[#allocation5 + $0x90] sm:$0xff]  ;;  %v314_v7 = vld [vmem:[#allocation5 + $0x80] sm:$0xff]  ;;  %s1207_s11 = sshll.u32 %s1898_s25, 3  ;;  %s1213_s22 = sld [smem:[#allocation2 + $0x1]] }
  0x16   : > { %v313_v8 = vld [vmem:[#allocation5 + $0x70] sm:$0xff]  ;;  %v312_v9 = vld [vmem:[#allocation5 + $0x60] sm:$0xff]  ;;  %s288_s14 = scalar_lea.vmem %s1872_s1, %s1207_s11  ;;  %s302_s30 = scalar_lea.vmem %s1877_s6, %s1207_s11 }
  0x17   : > { %358 = vmatpush.msra.mxu0 %v319_v2  ;;  %v311_v10 = vld [vmem:[#allocation5 + $0x50] sm:$0xff]  ;;  %v310_v11 = vld [vmem:[#allocation5 + $0x40] sm:$0xff]  ;;  %s1284_s13 = sshll.u32 %s1898_s25, 6 }
  0x18   : > { %v309_v12 = vld [vmem:[#allocation5 + $0x30] sm:$0xff]  ;;  %v308_v13 = vld [vmem:[#allocation5 + $0x20] sm:$0xff]  ;;  %s1745_s16 = scalar_lea.vmem %s1876_s5, %s1284_s13 }
  0x19   : > { %359 = vmatpush.msra.mxu0 %v318_v3  ;;  %v307_v14 = vld [vmem:[#allocation5 + $0x10] sm:$0xff]  ;;  %v306_v15 = vld [vmem:[#allocation5] sm:$0xff]  ;;  %v439_v46 = vstv %s1214_s19  ;;  %s1283_s19 = sshll.u32 %s1898_s25, 7 }
  0x1a   : > { %v355_v16 = vld [vmem:[%s288_s14] sm:$0xff]  ;;  %v325_v17 = vld [vmem:[#allocation5 + $0x130] sm:$0xff]  ;;  %v410_v55 = vstv %s303_s20  ;;  %s1820_s23 = scalar_lea.vmem %s1875_s4, %s1283_s19 }
  0x1b   : > { %360 = vmatpush.msra.mxu0 %v317_v4  ;;  %393 = vmatpush.msra.mxu1 %v325_v17  ;;  %v324_v18 = vld [vmem:[#allocation5 + $0x120] sm:$0xff]  ;;  %v323_v19 = vld [vmem:[#allocation5 + $0x110] sm:$0xff]  ;;  %v426_v2 = vstv %s1213_s22 }
  0x1c   : > { %v322_v20 = vld [vmem:[#allocation5 + $0x100] sm:$0xff] }
  0x1d   : > { %361 = vmatpush.msra.mxu0 %v316_v5  ;;  %394 = vmatpush.msra.mxu1 %v324_v18  ;;  %v346_v21 = vld [vmem:[%s1874_s3] ss:$0 sm:$0xff]  ;;  %v347_v27 = vld [vmem:[%s1874_s3 + $0x1] ss:$0 sm:$0xff]  ;;  %v1490_v5 = vmov 1  }
  0x1f   : > { %362 = vmatpush.msra.mxu0 %v315_v6  ;;  %395 = vmatpush.msra.mxu1 %v323_v19  ;;  %v1491_v6 = vmov 7  }
  0x20   : > { %1336 = vset.pattern.permute.xlu2 %v1491_v6 }
  0x21   : > { %363 = vmatpush.msra.mxu0 %v314_v7  ;;  %396 = vmatpush.msra.mxu1 %v322_v20  ;;  %v456_v7 = vlaneseq }
  0x23   : > { %364 = vmatpush.msra.mxu0 %v313_v8  ;;  %v457_v8 = vshrl.u32 %v456_v7, 7 }
  0x25   : > { %365 = vmatpush.msra.mxu0 %v312_v9  ;;  %v459_v9 = vand.u32 127, %v456_v7  ;;  %v484_v17 = vadd.s32 8, %v457_v8  ;;  %v485_v18 = vadd.s32 16, %v457_v8  ;;  %v1588_v25 = vadd.s32 24, %v457_v8 }
  0x26   : > { %v491_v26 = vcvt.s32.f32 %v457_v8 }
  0x27   : > { %366 = vmatpush.msra.mxu0 %v311_v10  ;;  %vm460_vm3 = vcmp.le.s32.totalorder %v457_v8, %v459_v9  ;;  %vm475_vm4 = vcmp.lt.s32.totalorder %v457_v8, %v459_v9  ;;  %vm1051_vm6 = vcmp.eq.s32.totalorder %v459_v9, 2  ;;  %vm1046_vm7 = vcmp.eq.s32.totalorder %v459_v9, 0 }
  0x28   : > { %vm1048_vm8 = vcmp.eq.s32.totalorder %v459_v9, 1 }
  0x29   : > { %367 = vmatpush.msra.mxu0 %v310_v11 }
  0x2b   : > { %368 = vmatpush.msra.mxu0 %v309_v12 }
  0x2d   : > { %369 = vmatpush.msra.mxu0 %v308_v13 }
  0x2f   : > { %370 = vmatpush.msra.mxu0 %v307_v14 }
  0x31   : > { %371 = vmatpush.msra.mxu0 %v306_v15 }
  0x32   : > { %372 = vmatmul.f32.vlgmr.msra.gmra.mxu0 %v355_v16 }
  0xaf   : > { %v373_v22 = vpop.f32.mrf.mxu0 }
  0xb0   : > { %v374_v23 = vadd.f32 %v373_v22, %v346_v21 }
  0xb2   : > { %1353 = vtanh.f32 %v374_v23  ;;  %v348_v23 = vld [vmem:[%s1874_s3 + $0x2] ss:$0 sm:$0xff] }
  0xb8   : > { %v1576_v24 = vpop.eup %1353 }
  0xb9   : > { %1216 = vmatmul.msk.f32.vlgmr.msra.gmra.mxu1 %vm377_vm0, %v1576_v24 }
 0x136   : > { %v398_v28 = vpop.f32.mrf.mxu1 }
 0x137   : > { %v399_v29 = vadd.f32 %v398_v28, %v347_v27  ;;  %v492_v27 = vcvt.s32.f32 %v484_v17  ;;  %v493_v28 = vcvt.s32.f32 %v485_v18 }
 0x139   : > { %v430_v30 = vsel %vm429_vm1, %v399_v29, 0.0  ;;  %v402_v31 = vand.u32 2147483647, %v399_v29  ;;  %v417_v36 = vsel %vm416_vm2, %v399_v29, 0.0  ;;  %v401_v53 = vmax.f32 %v399_v29, 0.0 }
 0x13a   : > { %v431_v32 = vrot.slane %v430_v30, 4  ;;  %v418_v39 = vrot.slane %v417_v36, 4 }
 0x13b   : > { %v403_v33 = vsub.f32 0.0, %v402_v31 }
 0x13c   : > { %v432_v34 = vadd.f32 %v431_v32, %v430_v30  ;;  %v419_v42 = vadd.f32 %v418_v39, %v417_v36  ;;  %v349_v30 = vld [vmem:[%s1874_s3 + $0x3] ss:$0 sm:$0xff]  ;;  %v1597_v36 = vadd.s32 48, %v457_v8 }
 0x13d   : > { %v404_v35 = vmul.f32 1.442695, %v403_v33 }
 0x13e   : > { %v433_v37 = vrot.slane %v432_v34, 2  ;;  %v420_v48 = vrot.slane %v419_v42, 2 }
 0x13f   : > { %1355 = vpow2.f32 %v404_v35  ;;  %v1595_v35 = vadd.s32 40, %v457_v8 }
 0x140   : > { %v434_v38 = vadd.f32 %v433_v37, %v432_v34  ;;  %v421_v51 = vadd.f32 %v420_v48, %v419_v42 }
 0x142   : > { %v435_v40 = vrot.slane %v434_v38, 1  ;;  %v422_v56 = vrot.slane %v421_v51, 1 }
 0x144   : > { %v436_v41 = vadd.f32 %v435_v40, %v434_v38  ;;  %v423_v59 = vadd.f32 %v422_v56, %v421_v51  ;;  %v1600_v40 = vadd.s32 56, %v457_v8 }
 0x145   : > { %v1356_v43 = vpop.eup %1355 }
 0x146   : > { %v437_v44 = vmul.f32 0.125, %v436_v41  ;;  %v406_v45 = vadd.f32 1.0, %v1356_v43  ;;  %v424_v62 = vmul.f32 0.125, %v423_v59 }
 0x148   : > { %v438_v47 = vsub.f32 %v399_v29, %v437_v44  ;;  %1357 = vlog2.f32 %v406_v45  ;;  %v425_v1 = vsub.f32 %v399_v29, %v424_v62  ;;  %v1590_v29 = vadd.s32 32, %v457_v8 }
 0x14a   : > { %v440_v49 = vmul.f32 %v439_v46, %v438_v47  ;;  %v427_v3 = vmul.f32 %v426_v2, %v425_v1  ;;  %v495_v51 = vcvt.s32.f32 %v1590_v29 }
 0x14c   : > { %v441_v50 = vadd.f32 %v440_v49, %v437_v44  ;;  %v428_v4 = vadd.f32 %v427_v3, %v424_v62  ;;  %v494_v44 = vcvt.s32.f32 %v1588_v25  ;;  %v326_v25 = vld [vmem:[#allocation5 + $0x140] sm:$0xff] }
 0x14e   : > { %v1358_v52 = vpop.eup %1357  ;;  %451 = vperm.xlu1 %1329, %v441_v50  }
 0x14f   : > { %v408_v54 = vmul.f32 0.6931472, %v1358_v52 }
 0x151   : > { %v409_v57 = vadd.f32 %v408_v54, %v401_v53  ;;  %v496_v53 = vcvt.s32.f32 %v1595_v35  ;;  %v497_v54 = vcvt.s32.f32 %v1597_v36 }
 0x153   : > { %v411_v58 = vmul.f32 %v410_v55, %v409_v57  ;;  %v498_v55 = vcvt.s32.f32 %v1600_v40 }
 0x155   : > { %v412_v60 = vadd.f32 0.5, %v411_v58 }
 0x156   : > { %1330 = vset.pattern.permute.xlu1 %v1491_v6 }
 0x157   : > { %v413_v61 = vfloor.f32 %v412_v60  ;;  %v1492_v60 = vmov 0.0  }
 0x159   : > { %v414_v63 = vmax.f32 %v413_v61, 1.0 }
 0x15b   : > { %v415_v0 = vmin.f32 %v414_v63, 64.0 }
 0x15d   : > { %463 = vperm.xlu0 %1327, %v415_v0  }
 0x165   : > { %1328 = vset.pattern.permute.xlu0 %v1490_v5 }
 0x166   : > { %444 = vperm.xlu0 %1328, %v428_v4  }
 0x16e   : > { %1352 = vset.pattern.permute.xlu0 %v1491_v6 }
 0x1c0   : > { %v452_v31 = vpop.permute.xlu1 %451 }
 0x1c1   : > { %v454_v45 = vmul.f32 %v452_v31, %v349_v30  ;;  %v1052_v46 = vsel %vm1051_vm6, %v452_v31, 0.0 }
 0x1cf   : > { %v464_v10 = vpop.permute.xlu0 %463 }
 0x1d0   : > { %v466_v11 = vsel %vm460_vm3, %v464_v10, 0.0  ;;  %v476_v12 = vsel %vm475_vm4, %v464_v10, 0.0  ;;  %v1047_v37 = vsel %vm1046_vm7, %v464_v10, 0.0 }
 0x1d1   : > { %v468_v13 = vsel %vm467_vm5, %v466_v11, 0.0  ;;  %v477_v14 = vsel %vm467_vm5, %v476_v12, 0.0 }
 0x1d2   : > { %v469_v15 = vrot.slane %v468_v13, 4  ;;  %v478_v16 = vrot.slane %v477_v14, 4 }
 0x1d4   : > { %v470_v19 = vadd.f32 %v469_v15, %v468_v13  ;;  %v479_v20 = vadd.f32 %v478_v16, %v477_v14 }
 0x1d6   : > { %v471_v21 = vrot.slane %v470_v19, 2  ;;  %v480_v22 = vrot.slane %v479_v20, 2 }
 0x1d8   : > { %v472_v32 = vadd.f32 %v471_v21, %v470_v19  ;;  %v481_v33 = vadd.f32 %v480_v22, %v479_v20  ;;  %v445_v34 = vpop.permute.xlu0 %444  ;;  %v329_v21 = vld [vmem:[#allocation5 + $0x170] sm:$0xff]  ;;  %v328_v22 = vld [vmem:[#allocation5 + $0x160] sm:$0xff] }
 0x1d9   : > { %v447_v38 = vmul.f32 %v445_v34, %v348_v23  ;;  %v1049_v39 = vsel %vm1048_vm8, %v445_v34, 0.0  ;;  %1287 = vmatpush.msra.mxu3 %v329_v21  ;;  %v327_v23 = vld [vmem:[#allocation5 + $0x150] sm:$0xff] }
 0x1da   : > { %v473_v41 = vrot.slane %v472_v32, 1  ;;  %v482_v42 = vrot.slane %v481_v33, 1  ;;  %v1050_v43 = vadd.f32 %v1049_v39, %v1047_v37 }
 0x1db   : > { %v448_v47 = vadd.f32 %v1576_v24, %v447_v38  ;;  %1288 = vmatpush.msra.mxu3 %v328_v22 }
 0x1dc   : > { %v474_v48 = vadd.f32 %v473_v41, %v472_v32  ;;  %v1610_v49 = vadd.f32 %v482_v42, %v481_v33  ;;  %v1053_v50 = vadd.f32 %v1052_v46, %v1050_v43  ;;  %v333_v42 = vld [vmem:[#allocation5 + $0x1b0] sm:$0xff] }
 0x1dd   : > { %v455_v52 = vadd.f32 %v454_v45, %v448_v47  ;;  %1289 = vmatpush.msra.mxu3 %v327_v23  ;;  %v337_v43 = vld [vmem:[#allocation5 + $0x1f0] sm:$0xff]  ;;  %v336_v45 = vld [vmem:[#allocation5 + $0x1e0] sm:$0xff] }
 0x1de   : > { %1054 = vst [vmem:[%s302_s30] sm:$0xff] %v1053_v50  ;;  %vm499_vm9 = vcmp.ge.f32.partialorder %v491_v26, %v1610_v49  ;;  %vm507_vm10 = vcmp.lt.f32.partialorder %v491_v26, %v474_v48  ;;  %vm1618_vm11 = vcmp.ge.f32.partialorder %v492_v27, %v1610_v49  ;;  %vm1622_vm12 = vcmp.lt.f32.partialorder %v492_v27, %v474_v48  ;;  %v331_v46 = vld [vmem:[#allocation5 + $0x190] sm:$0xff]  ;;  %v350_v50 = vld [vmem:[%s1874_s3 + $0x4] ss:$0 sm:$0xff] }
 0x1df   : > { %594 = vmatpush.msrb.mxu0 %v455_v52  ;;  %1285 = vmatpush.msrb.mxu1 %v455_v52  ;;  %vm515_vm13 = vmand %vm499_vm9, %vm507_vm10  ;;  %vm1627_vm14 = vcmp.ge.f32.partialorder %v493_v28, %v1610_v49  ;;  %vm1631_vm15 = vcmp.lt.f32.partialorder %v493_v28, %v474_v48  ;;  %vm1635_vm1 = vcmp.lt.f32.partialorder %v494_v44, %v474_v48  ;;  %v1225_v61 = vsel %vm507_vm10, 1.0, %v1492_v60  ;;  %v335_v47 = vld [vmem:[#allocation5 + $0x1d0] sm:$0xff] }
 0x1e0   : > { %1286 = vmatpush.msra.mxu2 %v455_v52  ;;  %v1217_v62 = vsel %vm515_vm13, 1.0, %v1492_v60  ;;  %vm516_vm2 = vmand %vm1618_vm11, %vm1622_vm12  ;;  %v1227_v63 = vsel %vm1631_vm15, 1.0, %v1492_v60  ;;  %v1228_v0 = vsel %vm1635_vm1, 1.0, %v1492_v60  ;;  %v1226_v1 = vsel %vm1622_vm12, 1.0, %v1492_v60  ;;  %1290 = vmatpush.msra.mxu3 %v326_v25 }
 0x1e1   : > { %1233 = vmatmul.msk.f32.vlgmr.msrb.gmra.mxu0 %vm467_vm5, %v1217_v62  ;;  %v1218_v2 = vsel %vm516_vm2, 1.0, %v1492_v60  ;;  %vm517_vm3 = vmand %vm1627_vm14, %vm1631_vm15  ;;  %v1337_v3 = vpack.i.bf16 %v1228_v0, %v1227_v63  ;;  %v1331_v4 = vpack.i.bf16 %v1226_v1, %v1225_v61  ;;  %vm1656_vm4 = vcmp.lt.f32.partialorder %v495_v51, %v474_v48  ;;  %664 = vmatpush.msra.mxu1 %v329_v21  ;;  %v344_v0 = vld [vmem:[#allocation5 + $0x230] sm:$0xff]  ;;  %v345_v1 = vld [vmem:[#allocation5 + $0x238] sm:$0xff] }
 0x1e2   : > { %1234 = vmatmul.msk.f32.vlgmr.msrb.gmra.mxu1 %vm467_vm5, %v1218_v2  ;;  %v1219_v5 = vsel %vm517_vm3, 1.0, %v1492_v60  ;;  %vm1660_vm6 = vcmp.lt.f32.partialorder %v496_v53, %v474_v48  ;;  %vm502_vm7 = vcmp.ge.f32.partialorder %v494_v44, %v1610_v49  ;;  %vm1665_vm8 = vcmp.lt.f32.partialorder %v497_v54, %v474_v48  ;;  %v332_v44 = vld [vmem:[#allocation5 + $0x1a0] sm:$0xff]  ;;  %834 = vmatpush.msra.mxu0 %v337_v43 }
 0x1e3   : > { %1235 = vmatmul.msk.f32.vlgmr.msra.gmra.mxu2 %vm467_vm5, %v1219_v5  ;;  %1338 = vperm.xlu2 %1336, %v1337_v3   ;;  %vm1669_vm9 = vcmp.lt.f32.partialorder %v498_v55, %v474_v48  ;;  %v1229_v10 = vsel %vm1656_vm4, 1.0, %v1492_v60  ;;  %v1230_v11 = vsel %vm1660_vm6, 1.0, %v1492_v60  ;;  %vm518_vm10 = vmand %vm502_vm7, %vm1635_vm1  ;;  %v1231_v12 = vsel %vm1665_vm8, 1.0, %v1492_v60  ;;  %v330_v48 = vld [vmem:[#allocation5 + $0x180] sm:$0xff]  ;;  %v343_v3 = vld [vmem:[#allocation5 + $0x228] sm:$0xff] }
 0x1e4   : > { %1332 = vperm.xlu1 %1330, %v1331_v4   ;;  %v1232_v13 = vsel %vm1669_vm9, 1.0, %v1492_v60  ;;  %v1342_v14 = vpack.i.bf16 %v1230_v11, %v1229_v10  ;;  %v1220_v15 = vsel %vm518_vm10, 1.0, %v1492_v60  ;;  %vm503_vm11 = vcmp.ge.f32.partialorder %v495_v51, %v1610_v49  ;;  %665 = vmatpush.msra.mxu1 %v328_v22  ;;  %v342_v2 = vld [vmem:[#allocation5 + $0x220] sm:$0xff]  ;;  %v340_v4 = vld [vmem:[#allocation5 + $0x210] sm:$0xff]  ;;  %v341_v5 = vld [vmem:[#allocation5 + $0x218] sm:$0xff] }
 0x1e5   : > { %v1347_v16 = vpack.i.bf16 %v1232_v13, %v1231_v12  ;;  %vm519_vm12 = vmand %vm503_vm11, %vm1656_vm4  ;;  %vm504_vm13 = vcmp.ge.f32.partialorder %v496_v53, %v1610_v49  ;;  %vm505_vm15 = vcmp.ge.f32.partialorder %v497_v54, %v1610_v49  ;;  %vm506_vm2 = vcmp.ge.f32.partialorder %v498_v55, %v1610_v49  ;;  %835 = vmatpush.msra.mxu0 %v336_v45  ;;  %v334_v49 = vld [vmem:[#allocation5 + $0x1c0] sm:$0xff] }
 0x1e6   : > { %v1221_v17 = vsel %vm519_vm12, 1.0, %v1492_v60  ;;  %vm520_vm14 = vmand %vm504_vm13, %vm1660_vm6  ;;  %666 = vmatpush.msra.mxu1 %v327_v23  ;;  %928 = vmatpush.msrb.mxu2 %v344_v0 }
 0x1e7   : > { %v1222_v18 = vsel %vm520_vm14, 1.0, %v1492_v60  ;;  %vm521_vm1 = vmand %vm505_vm15, %vm1665_vm8  ;;  %836 = vmatpush.msra.mxu0 %v335_v47  ;;  %969 = vmatpush.msrb.mxu3 %v345_v1 }
 0x1e8   : > { %v1223_v19 = vsel %vm521_vm1, 1.0, %v1492_v60  ;;  %vm522_vm3 = vmand %vm506_vm2, %vm1669_vm9  ;;  %667 = vmatpush.msra.mxu1 %v326_v25  ;;  %929 = vmatpush.msrb.mxu2 %v342_v2 }
 0x1e9   : > { %v1224_v20 = vsel %vm522_vm3, 1.0, %v1492_v60  ;;  %837 = vmatpush.msra.mxu0 %v334_v49  ;;  %970 = vmatpush.msrb.mxu3 %v343_v3 }
 0x1ea   : > { %737 = vmatpush.msrb.mxu1 %v333_v42  ;;  %930 = vmatpush.msrb.mxu2 %v340_v4 }
 0x1eb   : > { %1236 = vmatmul.msk.f32.gmra.mxu2 %vm467_vm5, %v1220_v15  ;;  %1343 = vperm.xlu2 %1336, %v1342_v14  }
 0x1ec   : > { %1348 = vperm.xlu1 %1330, %v1347_v16   ;;  %738 = vmatpush.msrb.mxu1 %v332_v44  ;;  %v338_v16 = vld [vmem:[#allocation5 + $0x200] sm:$0xff] }
 0x1ed   : > { %971 = vmatpush.msrb.mxu3 %v341_v5  ;;  %931 = vmatpush.msrb.mxu2 %v338_v16 }
 0x1ee   : > { %739 = vmatpush.msrb.mxu1 %v331_v46 }
 0x1f0   : > { %740 = vmatpush.msrb.mxu1 %v330_v48 }
 0x1f3   : > { %1237 = vmatmul.msk.f32.gmra.mxu2 %vm467_vm5, %v1221_v17  ;;  %v339_v17 = vld [vmem:[#allocation5 + $0x208] sm:$0xff] }
 0x1f4   : > { %972 = vmatpush.msrb.mxu3 %v339_v17 }
 0x1fb   : > { %1238 = vmatmul.msk.f32.gmra.mxu2 %vm467_vm5, %v1222_v18 }
 0x203   : > { %1239 = vmatmul.msk.f32.gmra.mxu2 %vm467_vm5, %v1223_v19  ;;  %v1730_v19 = vld [vmem:[%s1874_s3 + $0x5] ss:$0 sm:$0xff] }
 0x20b   : > { %1240 = vmatmul.msk.f32.gmra.mxu2 %vm467_vm5, %v1224_v20  ;;  %v1735_v20 = vld [vmem:[%s1874_s3 + $0x6] ss:$0 sm:$0xff] }
 0x256   : > { %v1333_v18 = vpop.permute.xlu1 %1332 }
 0x257   : > { %v1738_v23 = vunpack.i.l.bf16 %v1333_v18 }
 0x25e   : > { %v596_v26 = vpop.f32.mrf.mxu0 }
 0x25f   : > { %1359 = vtanh.f32 %v596_v26  ;;  %v599_v27 = vpop.f32.mrf.mxu1 }
 0x260   : > { %1361 = vtanh.f32 %v599_v27 }
 0x265   : > { %v1360_v28 = vpop.eup %1359 }
 0x266   : > { %v602_v29 = vpop.f32.mrf.mxu2  ;;  %1241 = vmatmul.msk.f32.vlgmr.msra.gmra.mxu1 %vm377_vm0, %v1360_v28  ;;  %v1362_v30 = vpop.eup %1361 }
 0x267   : > { %1363 = vtanh.f32 %v602_v29 }
 0x26d   : > { %v1364_v32 = vpop.eup %1363 }
 0x26e   : > { %v605_v31 = vpop.f32.mrf.mxu2  ;;  %1242 = vmatmul.msk.f32.gmra.mxu1 %vm377_vm0, %v1362_v30 }
 0x26f   : > { %1365 = vtanh.f32 %v605_v31 }
 0x275   : > { %v1366_v33 = vpop.eup %1365 }
 0x276   : > { %v608_v34 = vpop.f32.mrf.mxu2  ;;  %1244 = vmatmul.msk.f32.vlgmr.msra.gmra.mxu3 %vm377_vm0, %v1366_v33  ;;  %1243 = vmatmul.msk.f32.gmra.mxu1 %vm377_vm0, %v1364_v32  ;;  %v1751_v32 = vunpack.i.h.bf16 %v1333_v18 }
 0x277   : > { %1367 = vtanh.f32 %v608_v34 }
 0x27d   : > { %v1368_v35 = vpop.eup %1367 }
 0x27e   : > { %v611_v36 = vpop.f32.mrf.mxu2  ;;  %1245 = vmatmul.msk.f32.gmra.mxu3 %vm377_vm0, %v1368_v35 }
 0x27f   : > { %1369 = vtanh.f32 %v611_v36 }
 0x285   : > { %v1370_v37 = vpop.eup %1369 }
 0x286   : > { %v614_v38 = vpop.f32.mrf.mxu2  ;;  %1246 = vmatmul.msk.f32.gmra.mxu3 %vm377_vm0, %v1370_v37 }
 0x287   : > { %1371 = vtanh.f32 %v614_v38  ;;  %v1339_v38 = vpop.permute.xlu2 %1338 }
 0x288   : > { %v1767_v49 = vunpack.i.h.bf16 %v1339_v38 }
 0x28d   : > { %v1372_v39 = vpop.eup %1371 }
 0x28e   : > { %v617_v40 = vpop.f32.mrf.mxu2  ;;  %1247 = vmatmul.msk.f32.gmra.mxu3 %vm377_vm0, %v1372_v39 }
 0x28f   : > { %1373 = vtanh.f32 %v617_v40 }
 0x295   : > { %v1374_v41 = vpop.eup %1373 }
 0x296   : > { %1248 = vmatmul.msk.f32.gmra.mxu3 %vm377_vm0, %v1374_v41  ;;  %v1759_v41 = vunpack.i.l.bf16 %v1339_v38 }
 0x2e3   : > { %v669_v51 = vpop.f32.mrf.mxu1 }
 0x2e4   : > { %v670_v52 = vadd.f32 %v669_v51, %v350_v50 }
 0x2e6   : > { %1375 = vtanh.f32 %v670_v52 }
 0x2eb   : > { %v672_v53 = vpop.f32.mrf.mxu1 }
 0x2ec   : > { %v1376_v54 = vpop.eup %1375  ;;  %v673_v55 = vadd.f32 %v672_v53, %v350_v50 }
 0x2ed   : > { %1249 = vmatmul.msk.f32.vlgmr.msrb.gmra.mxu1 %vm377_vm0, %v1376_v54  ;;  %1257 = vmatmul.msk.f32.vlgmr.msra.gmra.mxu0 %vm377_vm0, %v1376_v54 }
 0x2ee   : > { %1377 = vtanh.f32 %v673_v55  ;;  %v1344_v55 = vpop.permute.xlu2 %1343 }
 0x2ef   : > { %v1783_v1 = vunpack.i.h.bf16 %v1344_v55 }
 0x2f3   : > { %v675_v24 = vpop.f32.mrf.mxu1 }
 0x2f4   : > { %v1378_v56 = vpop.eup %1377  ;;  %v676_v57 = vadd.f32 %v675_v24, %v350_v50 }
 0x2f5   : > { %1250 = vmatmul.msk.f32.gmra.mxu1 %vm377_vm0, %v1378_v56  ;;  %1258 = vmatmul.msk.f32.gmra.mxu0 %vm377_vm0, %v1378_v56 }
 0x2f6   : > { %1379 = vtanh.f32 %v676_v57  ;;  %v1775_v57 = vunpack.i.l.bf16 %v1344_v55 }
 0x2f9   : > { %v678_v58 = vpop.f32.mrf.mxu3 }
 0x2fa   : > { %v679_v59 = vadd.f32 %v678_v58, %v350_v50 }
 0x2fc   : > { %v1380_v60 = vpop.eup %1379  ;;  %1381 = vtanh.f32 %v679_v59 }
 0x2fd   : > { %1251 = vmatmul.msk.f32.gmra.mxu1 %vm377_vm0, %v1380_v60  ;;  %1259 = vmatmul.msk.f32.gmra.mxu0 %vm377_vm0, %v1380_v60 }
 0x301   : > { %v681_v61 = vpop.f32.mrf.mxu3 }
 0x302   : > { %v682_v62 = vadd.f32 %v681_v61, %v350_v50  ;;  %v1382_v63 = vpop.eup %1381 }
 0x304   : > { %1383 = vtanh.f32 %v682_v62 }
 0x305   : > { %1252 = vmatmul.msk.f32.gmra.mxu1 %vm377_vm0, %v1382_v63  ;;  %1260 = vmatmul.msk.f32.gmra.mxu0 %vm377_vm0, %v1382_v63 }
 0x309   : > { %v684_v6 = vpop.f32.mrf.mxu3 }
 0x30a   : > { %v685_v7 = vadd.f32 %v684_v6, %v350_v50  ;;  %v1384_v8 = vpop.eup %1383 }
 0x30c   : > { %1385 = vtanh.f32 %v685_v7  ;;  %v1349_v7 = vpop.permute.xlu1 %1348 }
 0x30d   : > { %1253 = vmatmul.msk.f32.gmra.mxu1 %vm377_vm0, %v1384_v8  ;;  %1261 = vmatmul.msk.f32.gmra.mxu0 %vm377_vm0, %v1384_v8  ;;  %v1799_v18 = vunpack.i.h.bf16 %v1349_v7 }
 0x311   : > { %v687_v9 = vpop.f32.mrf.mxu3 }
 0x312   : > { %v688_v10 = vadd.f32 %v687_v9, %v350_v50  ;;  %v1386_v11 = vpop.eup %1385 }
 0x314   : > { %1387 = vtanh.f32 %v688_v10  ;;  %v1791_v10 = vunpack.i.l.bf16 %v1349_v7 }
 0x315   : > { %1254 = vmatmul.msk.f32.gmra.mxu1 %vm377_vm0, %v1386_v11  ;;  %1262 = vmatmul.msk.f32.gmra.mxu0 %vm377_vm0, %v1386_v11 }
 0x319   : > { %v690_v12 = vpop.f32.mrf.mxu3 }
 0x31a   : > { %v691_v13 = vadd.f32 %v690_v12, %v350_v50  ;;  %v1388_v14 = vpop.eup %1387 }
 0x31c   : > { %1389 = vtanh.f32 %v691_v13 }
 0x31d   : > { %1255 = vmatmul.msk.f32.gmra.mxu1 %vm377_vm0, %v1388_v14  ;;  %1263 = vmatmul.msk.f32.gmra.mxu0 %vm377_vm0, %v1388_v14 }
 0x322   : > { %v1390_v15 = vpop.eup %1389 }
 0x325   : > { %1256 = vmatmul.msk.f32.gmra.mxu1 %vm377_vm0, %v1390_v15  ;;  %1264 = vmatmul.msk.f32.gmra.mxu0 %vm377_vm0, %v1390_v15 }
 0x36a   : > { %v742_v21 = vpop.f32.mrf.mxu1  ;;  %v839_v22 = vpop.f32.mrf.mxu0 }
 0x36b   : > { %v743_v25 = vadd.f32 %v742_v21, %v1730_v19  ;;  %v840_v26 = vadd.f32 %v839_v22, %v1735_v20 }
 0x36d   : > { %v806_v27 = vmul.f32 %v1738_v23, %v743_v25  ;;  %vm863_vm5 = vcmp.gt.f32.partialorder %v840_v26, 0.0  ;;  %v871_v28 = vmul.f32 0.1, %v840_v26 }
 0x36f   : > { %814 = vst [vmem:[%s1745_s16] sm:$0xff] %v806_v27  ;;  %v879_v29 = vsel %vm863_vm5, %v840_v26, %v871_v28  ;;  %v1215_v28 = vld [vmem:[%s1874_s3 + $0x7] ss:$8 sm:$0x3] }
 0x370   : > { %1265 = vmatmul.msk.f32.vlgmr.msrb.gmra.mxu2 %vm377_vm0, %v879_v29  ;;  %1273 = vmatmul.msk.f32.vlgmr.msrb.gmra.mxu3 %vm377_vm0, %v879_v29  ;;  %v1810_v29 = vperm.slane %v1215_v28, 0 }
 0x372   : > { %v745_v30 = vpop.f32.mrf.mxu1  ;;  %v842_v31 = vpop.f32.mrf.mxu0 }
 0x373   : > { %v746_v33 = vadd.f32 %v745_v30, %v1730_v19  ;;  %v843_v34 = vadd.f32 %v842_v31, %v1735_v20 }
 0x375   : > { %v807_v35 = vmul.f32 %v1751_v32, %v746_v33  ;;  %v872_v36 = vmul.f32 0.1, %v843_v34  ;;  %vm864_vm4 = vcmp.gt.f32.partialorder %v843_v34, 0.0 }
 0x377   : > { %815 = vst [vmem:[%s1745_s16 + $0x8] sm:$0xff] %v807_v35  ;;  %v880_v37 = vsel %vm864_vm4, %v843_v34, %v872_v36 }
 0x378   : > { %1266 = vmatmul.msk.f32.gmra.mxu2 %vm377_vm0, %v880_v37  ;;  %1274 = vmatmul.msk.f32.gmra.mxu3 %vm377_vm0, %v880_v37 }
 0x37a   : > { %v748_v39 = vpop.f32.mrf.mxu1  ;;  %v845_v40 = vpop.f32.mrf.mxu0 }
 0x37b   : > { %v749_v42 = vadd.f32 %v748_v39, %v1730_v19  ;;  %v846_v43 = vadd.f32 %v845_v40, %v1735_v20 }
 0x37d   : > { %v808_v44 = vmul.f32 %v1759_v41, %v749_v42  ;;  %v873_v45 = vmul.f32 0.1, %v846_v43  ;;  %vm865_vm6 = vcmp.gt.f32.partialorder %v846_v43, 0.0 }
 0x37f   : > { %816 = vst [vmem:[%s1745_s16 + $0x10] sm:$0xff] %v808_v44  ;;  %v881_v46 = vsel %vm865_vm6, %v846_v43, %v873_v45 }
 0x380   : > { %1267 = vmatmul.msk.f32.gmra.mxu2 %vm377_vm0, %v881_v46  ;;  %1275 = vmatmul.msk.f32.gmra.mxu3 %vm377_vm0, %v881_v46 }
 0x382   : > { %v751_v47 = vpop.f32.mrf.mxu1  ;;  %v848_v48 = vpop.f32.mrf.mxu0 }
 0x383   : > { %v752_v50 = vadd.f32 %v751_v47, %v1730_v19  ;;  %v849_v51 = vadd.f32 %v848_v48, %v1735_v20 }
 0x385   : > { %v809_v52 = vmul.f32 %v1767_v49, %v752_v50  ;;  %v874_v53 = vmul.f32 0.1, %v849_v51  ;;  %vm866_vm7 = vcmp.gt.f32.partialorder %v849_v51, 0.0 }
 0x387   : > { %817 = vst [vmem:[%s1745_s16 + $0x18] sm:$0xff] %v809_v52  ;;  %v882_v54 = vsel %vm866_vm7, %v849_v51, %v874_v53 }
 0x388   : > { %1268 = vmatmul.msk.f32.gmra.mxu2 %vm377_vm0, %v882_v54  ;;  %1276 = vmatmul.msk.f32.gmra.mxu3 %vm377_vm0, %v882_v54 }
 0x38a   : > { %v754_v24 = vpop.f32.mrf.mxu1  ;;  %v851_v56 = vpop.f32.mrf.mxu0 }
 0x38b   : > { %v755_v58 = vadd.f32 %v754_v24, %v1730_v19  ;;  %v852_v59 = vadd.f32 %v851_v56, %v1735_v20 }
 0x38d   : > { %v810_v60 = vmul.f32 %v1775_v57, %v755_v58  ;;  %v875_v61 = vmul.f32 0.1, %v852_v59  ;;  %vm867_vm8 = vcmp.gt.f32.partialorder %v852_v59, 0.0 }
 0x38f   : > { %818 = vst [vmem:[%s1745_s16 + $0x20] sm:$0xff] %v810_v60  ;;  %v883_v62 = vsel %vm867_vm8, %v852_v59, %v875_v61 }
 0x390   : > { %1269 = vmatmul.msk.f32.gmra.mxu2 %vm377_vm0, %v883_v62  ;;  %1277 = vmatmul.msk.f32.gmra.mxu3 %vm377_vm0, %v883_v62 }
 0x392   : > { %v757_v63 = vpop.f32.mrf.mxu1  ;;  %v854_v0 = vpop.f32.mrf.mxu0 }
 0x393   : > { %v758_v2 = vadd.f32 %v757_v63, %v1730_v19  ;;  %v855_v3 = vadd.f32 %v854_v0, %v1735_v20 }
 0x395   : > { %v811_v4 = vmul.f32 %v1783_v1, %v758_v2  ;;  %v876_v5 = vmul.f32 0.1, %v855_v3  ;;  %vm868_vm9 = vcmp.gt.f32.partialorder %v855_v3, 0.0 }
 0x397   : > { %819 = vst [vmem:[%s1745_s16 + $0x28] sm:$0xff] %v811_v4  ;;  %v884_v6 = vsel %vm868_vm9, %v855_v3, %v876_v5 }
 0x398   : > { %1270 = vmatmul.msk.f32.gmra.mxu2 %vm377_vm0, %v884_v6  ;;  %1278 = vmatmul.msk.f32.gmra.mxu3 %vm377_vm0, %v884_v6 }
 0x39a   : > { %v760_v8 = vpop.f32.mrf.mxu1  ;;  %v857_v9 = vpop.f32.mrf.mxu0 }
 0x39b   : > { %v761_v11 = vadd.f32 %v760_v8, %v1730_v19  ;;  %v858_v12 = vadd.f32 %v857_v9, %v1735_v20 }
 0x39d   : > { %v812_v13 = vmul.f32 %v1791_v10, %v761_v11  ;;  %v877_v14 = vmul.f32 0.1, %v858_v12  ;;  %vm869_vm10 = vcmp.gt.f32.partialorder %v858_v12, 0.0 }
 0x39f   : > { %820 = vst [vmem:[%s1745_s16 + $0x30] sm:$0xff] %v812_v13  ;;  %v885_v15 = vsel %vm869_vm10, %v858_v12, %v877_v14 }
 0x3a0   : > { %1271 = vmatmul.msk.f32.gmra.mxu2 %vm377_vm0, %v885_v15  ;;  %1279 = vmatmul.msk.f32.gmra.mxu3 %vm377_vm0, %v885_v15 }
 0x3a2   : > { %v763_v16 = vpop.f32.mrf.mxu1  ;;  %v860_v17 = vpop.f32.mrf.mxu0 }
 0x3a3   : > { %v764_v21 = vadd.f32 %v763_v16, %v1730_v19  ;;  %v861_v22 = vadd.f32 %v860_v17, %v1735_v20  ;;  %v1812_v19 = vperm.slane %v1215_v28, 1 }
 0x3a5   : > { %v813_v25 = vmul.f32 %v1799_v18, %v764_v21  ;;  %v878_v26 = vmul.f32 0.1, %v861_v22  ;;  %vm870_vm11 = vcmp.gt.f32.partialorder %v861_v22, 0.0 }
 0x3a7   : > { %821 = vst [vmem:[%s1745_s16 + $0x38] sm:$0xff] %v813_v25  ;;  %v886_v27 = vsel %vm870_vm11, %v861_v22, %v878_v26 }
 0x3a8   : > { %1272 = vmatmul.msk.f32.gmra.mxu2 %vm377_vm0, %v886_v27  ;;  %1280 = vmatmul.msk.f32.gmra.mxu3 %vm377_vm0, %v886_v27 }
 0x3f3   : > { %v933_v20 = vpop.f32.mrf.mxu2  ;;  %v974_v30 = vpop.f32.mrf.mxu3 }
 0x3f4   : > { %v934_v31 = vadd.f32 %v933_v20, %v1810_v29  ;;  %v975_v33 = vadd.f32 %v974_v30, %v1812_v19 }
 0x3f6   : > { %1391 = vtanh.f32 %v934_v31 }
 0x3f7   : > { %1393 = vtanh.f32 %v975_v33 }
 0x3fb   : > { %v936_v34 = vpop.f32.mrf.mxu2  ;;  %v977_v35 = vpop.f32.mrf.mxu3 }
 0x3fc   : > { %v1392_v36 = vpop.eup %1391  ;;  %v937_v37 = vadd.f32 %v936_v34, %v1810_v29  ;;  %v978_v38 = vadd.f32 %v977_v35, %v1812_v19 }
 0x3fd   : > { %v1394_v39 = vpop.eup %1393  ;;  %v1014_v40 = vmul.f32 %v1392_v36, %v1738_v23 }
 0x3fe   : > { %v1015_v42 = vmul.f32 %v1394_v39, %v1738_v23  ;;  %1395 = vtanh.f32 %v937_v37 }
 0x3ff   : > { %1030 = vst [vmem:[%s1820_s23] sm:$0xff] %v1014_v40  ;;  %1397 = vtanh.f32 %v978_v38 }
 0x400   : > { %1031 = vst [vmem:[%s1820_s23 + $0x8] sm:$0xff] %v1015_v42 }
 0x403   : > { %v939_v43 = vpop.f32.mrf.mxu2  ;;  %v980_v44 = vpop.f32.mrf.mxu3 }
 0x404   : > { %v1396_v45 = vpop.eup %1395  ;;  %v940_v46 = vadd.f32 %v939_v43, %v1810_v29  ;;  %v981_v47 = vadd.f32 %v980_v44, %v1812_v19 }
 0x405   : > { %v1398_v48 = vpop.eup %1397  ;;  %v1016_v50 = vmul.f32 %v1396_v45, %v1751_v32 }
 0x406   : > { %v1017_v51 = vmul.f32 %v1398_v48, %v1751_v32  ;;  %1399 = vtanh.f32 %v940_v46 }
 0x407   : > { %1032 = vst [vmem:[%s1820_s23 + $0x10] sm:$0xff] %v1016_v50  ;;  %1401 = vtanh.f32 %v981_v47 }
 0x408   : > { %1033 = vst [vmem:[%s1820_s23 + $0x18] sm:$0xff] %v1017_v51 }
 0x40b   : > { %v942_v23 = vpop.f32.mrf.mxu2  ;;  %v983_v52 = vpop.f32.mrf.mxu3 }
 0x40c   : > { %v1400_v53 = vpop.eup %1399  ;;  %v943_v54 = vadd.f32 %v942_v23, %v1810_v29  ;;  %v984_v55 = vadd.f32 %v983_v52, %v1812_v19 }
 0x40d   : > { %v1402_v24 = vpop.eup %1401  ;;  %v1018_v56 = vmul.f32 %v1400_v53, %v1759_v41 }
 0x40e   : > { %v1019_v58 = vmul.f32 %v1402_v24, %v1759_v41  ;;  %1403 = vtanh.f32 %v943_v54 }
 0x40f   : > { %1034 = vst [vmem:[%s1820_s23 + $0x20] sm:$0xff] %v1018_v56  ;;  %1405 = vtanh.f32 %v984_v55 }
 0x410   : > { %1035 = vst [vmem:[%s1820_s23 + $0x28] sm:$0xff] %v1019_v58 }
 0x413   : > { %v945_v32 = vpop.f32.mrf.mxu2  ;;  %v986_v59 = vpop.f32.mrf.mxu3 }
 0x414   : > { %v1404_v60 = vpop.eup %1403  ;;  %v946_v61 = vadd.f32 %v945_v32, %v1810_v29  ;;  %v987_v62 = vadd.f32 %v986_v59, %v1812_v19 }
 0x415   : > { %v1406_v63 = vpop.eup %1405  ;;  %v1020_v0 = vmul.f32 %v1404_v60, %v1767_v49 }
 0x416   : > { %v1021_v2 = vmul.f32 %v1406_v63, %v1767_v49  ;;  %1407 = vtanh.f32 %v946_v61 }
 0x417   : > { %1036 = vst [vmem:[%s1820_s23 + $0x30] sm:$0xff] %v1020_v0  ;;  %1409 = vtanh.f32 %v987_v62 }
 0x418   : > { %1037 = vst [vmem:[%s1820_s23 + $0x38] sm:$0xff] %v1021_v2 }
 0x41b   : > { %v948_v41 = vpop.f32.mrf.mxu2  ;;  %v989_v3 = vpop.f32.mrf.mxu3 }
 0x41c   : > { %v1408_v4 = vpop.eup %1407  ;;  %v949_v5 = vadd.f32 %v948_v41, %v1810_v29  ;;  %v990_v6 = vadd.f32 %v989_v3, %v1812_v19 }
 0x41d   : > { %v1410_v7 = vpop.eup %1409  ;;  %v1022_v8 = vmul.f32 %v1408_v4, %v1775_v57 }
 0x41e   : > { %v1023_v9 = vmul.f32 %v1410_v7, %v1775_v57  ;;  %1411 = vtanh.f32 %v949_v5 }
 0x41f   : > { %1038 = vst [vmem:[%s1820_s23 + $0x40] sm:$0xff] %v1022_v8  ;;  %1413 = vtanh.f32 %v990_v6 }
 0x420   : > { %1039 = vst [vmem:[%s1820_s23 + $0x48] sm:$0xff] %v1023_v9 }
 0x423   : > { %v951_v49 = vpop.f32.mrf.mxu2  ;;  %v992_v11 = vpop.f32.mrf.mxu3 }
 0x424   : > { %v1412_v12 = vpop.eup %1411  ;;  %v952_v13 = vadd.f32 %v951_v49, %v1810_v29  ;;  %v993_v14 = vadd.f32 %v992_v11, %v1812_v19 }
 0x425   : > { %v1414_v15 = vpop.eup %1413  ;;  %v1024_v16 = vmul.f32 %v1412_v12, %v1783_v1 }
 0x426   : > { %v1025_v17 = vmul.f32 %v1414_v15, %v1783_v1  ;;  %1415 = vtanh.f32 %v952_v13 }
 0x427   : > { %1040 = vst [vmem:[%s1820_s23 + $0x50] sm:$0xff] %v1024_v16  ;;  %1417 = vtanh.f32 %v993_v14 }
 0x428   : > { %1041 = vst [vmem:[%s1820_s23 + $0x58] sm:$0xff] %v1025_v17 }
 0x42b   : > { %v954_v57 = vpop.f32.mrf.mxu2  ;;  %v995_v21 = vpop.f32.mrf.mxu3 }
 0x42c   : > { %v1416_v22 = vpop.eup %1415  ;;  %v955_v25 = vadd.f32 %v954_v57, %v1810_v29  ;;  %v996_v26 = vadd.f32 %v995_v21, %v1812_v19 }
 0x42d   : > { %v1418_v27 = vpop.eup %1417  ;;  %v1026_v28 = vmul.f32 %v1416_v22, %v1791_v10 }
 0x42e   : > { %v1027_v20 = vmul.f32 %v1418_v27, %v1791_v10  ;;  %1419 = vtanh.f32 %v955_v25 }
 0x42f   : > { %1042 = vst [vmem:[%s1820_s23 + $0x60] sm:$0xff] %v1026_v28  ;;  %1421 = vtanh.f32 %v996_v26 }
 0x430   : > { %1043 = vst [vmem:[%s1820_s23 + $0x68] sm:$0xff] %v1027_v20 }
 0x434   : > { %v1420_v1 = vpop.eup %1419 }
 0x435   : > { %v1422_v30 = vpop.eup %1421  ;;  %v1028_v31 = vmul.f32 %v1420_v1, %v1799_v18 }
 0x436   : > { %v1029_v33 = vmul.f32 %v1422_v30, %v1799_v18 }
 0x437   : > { %1044 = vst [vmem:[%s1820_s23 + $0x70] sm:$0xff] %v1028_v31 }
 0x438   : > { %1045 = vst [vmem:[%s1820_s23 + $0x78] sm:$0xff] %v1029_v33 }
 0x439 PF: > { %s19_s21 = sadd.s32 1, %s1482_s21  }
 0x43a   : > { %p16_p7 = scmp.ge.s32.totalorder %s19_s21, 4  }
 0x43c   :  { %18 = sbr.rel (!%p16_p7) target bundleno = 2 (0x2), region = 101 }
 0x441   :  { %1106 = vsyncpa [#allocation3], 1 }
 0x442   :  { %1108 = vsyncpa [#allocation3 + $0x1], 1 }
 0x443   :  { %1109 = vsyncpa [#allocation4], 1 }
 0x444   :  { %1111 = vsyncpa [#allocation4 + $0x1], 1 }

</bundles_post_ra>
